<compile_context>
chip_gen: v6e
topology: v6e:2x2x1
jax: 0.10.0
libtpu: 0.0.40
codegen_flags: <defaults>
</compile_context>

<pallas_src>
import jax
import jax.numpy as jnp
from jax import lax
from jax.experimental import pallas as pl
from jax.experimental.pallas import tpu as pltpu

EPS = 1e-5
HIDDEN = 200          # transformed_layers = [200, 200]
H_PAD = 256           # lane-dense padded hidden width (multiple of 128)
SUBLANE = 8
BF16_SUBLANE = 16     # bf16 packs 2 rows per sublane -> pad second-minor dims to 16


def _round_up(x, m):
    return (x + m - 1) // m * m


def _fused_stream_kernel(counts_ref, x_ref, w1_ref, pv_ref, w2_ref, o_ref):
    """One stream per grid step (0=user, 1=item): Linear -> BN(train) -> tanh -> Linear.

    counts_ref: SMEM (2,) int32     valid batch rows per stream (scalar prefetch)
    x_ref:      [B_pad, D_pad] f32  w1_ref: [D_pad, H_PAD] bf16
    pv_ref:     [8, H_PAD]    f32   rows: 0=b1, 1=gamma, 2=beta, 3=b2 (4..7 zero pad)
    w2_ref:     [H_PAD, H_PAD] bf16 o_ref:  [B_pad, H_PAD] f32
    """
    s = pl.program_id(0)
    n_rows = counts_ref[s]                                  # valid (unpadded) rows
    inv_n = 1.0 / n_rows.astype(jnp.float32)

    pv = pv_ref[...]
    b1, gamma, beta, b2 = pv[0:1, :], pv[1:2, :], pv[2:3, :], pv[3:4, :]

    # Linear 1: bf16 MXU operands, f32 accumulation.
    h = jnp.dot(x_ref[...].astype(jnp.bfloat16), w1_ref[...],
                preferred_element_type=jnp.float32) + b1

    # BatchNorm1d training-mode stats (biased var), excluding padded batch rows.
    row_ids = lax.broadcasted_iota(jnp.int32, (h.shape[0], 1), 0)
    mask = (row_ids < n_rows).astype(jnp.float32)           # [B_pad, 1]
    mean = jnp.sum(h * mask, axis=0, keepdims=True) * inv_n
    diff = (h - mean) * mask
    var = jnp.sum(diff * diff, axis=0, keepdims=True) * inv_n

    scale = gamma * lax.rsqrt(var + EPS)                    # fold BN affine
    shift = beta - mean * scale
    y = jnp.tanh(h * scale + shift)                         # EUP

    # Linear 2 (output layer): bf16 MXU operands, f32 accumulation.
    o_ref[...] = jnp.dot(y.astype(jnp.bfloat16), w2_ref[...],
                         preferred_element_type=jnp.float32) + b2


def _stream_dimension_semantics():
    """v7x has 2 TensorCores/chip: split the size-2 stream axis across them.
    Single-TC chips (v5e/v6e) run the grid as a serial 2-step loop ("arbitrary")."""
    try:
        kind = jax.devices()[0].device_kind.lower()
    except Exception:
        kind = ""
    if "7" in kind:                       # e.g. "TPU7x" / "TPU v7x"
        return (pltpu.CORE_PARALLEL,)
    return ("arbitrary",)


def init_params(key, emb_dim, content_dim):
    """Deterministic synthetic parameters with the shapes Model.__init__ creates.

    Weight matrices are stored transposed ([in, out]) so the kernel does x @ W.
    """
    ks = jax.random.split(key, 10)
    scale = 0.1
    return {
        # item_layers[0]: Linear(content_dim, 200)
        "item_w1_t": scale * jax.random.normal(ks[0], (content_dim, HIDDEN), jnp.float32),
        "item_b1": scale * jax.random.normal(ks[1], (1, HIDDEN), jnp.float32),
        # user_layers[0]: Linear(emb_dim, 200)
        "user_w1_t": scale * jax.random.normal(ks[2], (emb_dim, HIDDEN), jnp.float32),
        "user_b1": scale * jax.random.normal(ks[3], (1, HIDDEN), jnp.float32),
        # batch_norms[0]: BatchNorm1d(200) affine params (shared by both streams)
        "bn_gamma": jnp.ones((1, HIDDEN), jnp.float32)
                    + 0.01 * jax.random.normal(ks[4], (1, HIDDEN), jnp.float32),
        "bn_beta": 0.01 * jax.random.normal(ks[5], (1, HIDDEN), jnp.float32),
        # item_output: Linear(200, 200)
        "item_wo_t": scale * jax.random.normal(ks[6], (HIDDEN, HIDDEN), jnp.float32),
        "item_bo": scale * jax.random.normal(ks[7], (1, HIDDEN), jnp.float32),
        # user_output: Linear(200, 200)
        "user_wo_t": scale * jax.random.normal(ks[8], (HIDDEN, HIDDEN), jnp.float32),
        "user_bo": scale * jax.random.normal(ks[9], (1, HIDDEN), jnp.float32),
    }


def pack_params(params):
    """One-time packing: zero-pad to lane-dense shapes, cast weights to bf16, stack streams."""
    d_pad = _round_up(max(params["user_w1_t"].shape[0],
                          params["item_w1_t"].shape[0]), BF16_SUBLANE)

    def pad_w1(w):   # [d_in, 200] -> [d_pad, H_PAD] bf16
        w = jnp.pad(w, ((0, d_pad - w.shape[0]), (0, H_PAD - w.shape[1])))
        return w.astype(jnp.bfloat16)

    def pad_w2(w):   # [200, 200] -> [H_PAD, H_PAD] bf16
        w = jnp.pad(w, ((0, H_PAD - w.shape[0]), (0, H_PAD - w.shape[1])))
        return w.astype(jnp.bfloat16)

    def pad_vec(v):  # [1, 200] -> [1, H_PAD] f32
        return jnp.pad(v, ((0, 0), (0, H_PAD - v.shape[1])))

    def pvec(b1, bo):  # one aligned (8, H_PAD) f32 param tile: b1, gamma, beta, b2, pad
        return jnp.concatenate(
            [pad_vec(b1), pad_vec(params["bn_gamma"]), pad_vec(params["bn_beta"]),
             pad_vec(bo), jnp.zeros((SUBLANE - 4, H_PAD), jnp.float32)], axis=0)

    return {
        "d_pad": d_pad,
        "w1": jnp.stack([pad_w1(params["user_w1_t"]), pad_w1(params["item_w1_t"])]),
        "pv": jnp.stack([pvec(params["user_b1"], params["user_bo"]),
                         pvec(params["item_b1"], params["item_bo"])]),
        "w2": jnp.stack([pad_w2(params["user_wo_t"]), pad_w2(params["item_wo_t"])]),
    }


def model_forward(packed, user_emb, item_content_emb):
    """Equivalent of Model.forward -> (gen_user_emb, gen_item_emb), single pallas_call.

    Returns lane-dense [*, H_PAD] outputs; columns HIDDEN: are exactly zero (zero-padded
    w2 columns / b2), so downstream consumers can slice [:, :HIDDEN] only if they must.
    """
    user_emb = user_emb.astype(jnp.float32)
    item_content_emb = item_content_emb.astype(jnp.float32)
    d_pad = packed["d_pad"]
    b_u, b_i = user_emb.shape[0], item_content_emb.shape[0]
    b_pad = _round_up(max(b_u, b_i), BF16_SUBLANE)

    def pad_x(x):
        return jnp.pad(x, ((0, b_pad - x.shape[0]), (0, d_pad - x.shape[1])))

    x = jnp.stack([pad_x(user_emb), pad_x(item_content_emb)])   # [2, B_pad, d_pad] f32
    counts = jnp.array([b_u, b_i], jnp.int32)                   # scalar-prefetch input

    def spec(shape):
        # Index maps receive the scalar-prefetch ref as a trailing positional arg.
        return pl.BlockSpec((pl.Squeezed(),) + shape, lambda s, counts: (s, 0, 0))

    grid_spec = pltpu.PrefetchScalarGridSpec(
        num_scalar_prefetch=1,
        grid=(2,),                                   # stream axis: user / item
        in_specs=[
            spec((b_pad, d_pad)),                    # x  (f32)
            spec((d_pad, H_PAD)),                    # w1 (bf16)
            spec((SUBLANE, H_PAD)),                  # packed b1/gamma/beta/b2 (f32)
            spec((H_PAD, H_PAD)),                    # w2 (bf16)
        ],
        out_specs=spec((b_pad, H_PAD)),
    )

    out = pl.pallas_call(
        _fused_stream_kernel,
        out_shape=jax.ShapeDtypeStruct((2, b_pad, H_PAD), jnp.float32),
        grid_spec=grid_spec,
        compiler_params=pltpu.CompilerParams(
            dimension_semantics=_stream_dimension_semantics()),
    )(counts, x, packed["w1"], packed["pv"], packed["w2"])

    # TODO(synk): if production batches grow large, add a batch grid axis with
    # weight index_maps that ignore it (VMEM-resident weights, one DMA per stream).
    gen_user_emb = out[0, :b_u]     # [b_u, H_PAD]; cols HIDDEN: are zero
    gen_item_emb = out[1, :b_i]     # [b_i, H_PAD]; cols HIDDEN: are zero
    return gen_user_emb, gen_item_emb


def _reference_stream(x, w1_t, b1, gamma, beta, w2_t, b2, match_kernel_precision=False):
    """Pure-JAX reference. match_kernel_precision=True mirrors the kernel's bf16/f32 mix."""
    if match_kernel_precision:
        h = jnp.dot(x.astype(jnp.bfloat16), w1_t.astype(jnp.bfloat16),
                    preferred_element_type=jnp.float32) + b1
        mean = h.mean(axis=0, keepdims=True)
        var = ((h - mean) ** 2).mean(axis=0, keepdims=True)
        scale = gamma * lax.rsqrt(var + EPS)
        y = jnp.tanh(h * scale + (beta - mean * scale))
        return jnp.dot(y.astype(jnp.bfloat16), w2_t.astype(jnp.bfloat16),
                       preferred_element_type=jnp.float32) + b2
    h = x @ w1_t + b1
    mean = h.mean(axis=0, keepdims=True)
    var = ((h - mean) ** 2).mean(axis=0, keepdims=True)
    y = jnp.tanh((h - mean) / jnp.sqrt(var + EPS) * gamma + beta)
    return y @ w2_t + b2


if __name__ == "__main__":
    emb_dim = 32
    content_dim = 48
    batch_users = 8
    batch_items = 16  # pos+neg items (even, matching calcLoss's view(2, -1))

    key = jax.random.PRNGKey(0)
    k_param, k_user, k_item = jax.random.split(key, 3)

    params = init_params(k_param, emb_dim, content_dim)
    packed = pack_params(params)
    user_emb = jax.random.normal(k_user, (batch_users, emb_dim), jnp.float32)
    item_content_emb = jax.random.normal(k_item, (batch_items, content_dim),
                                         jnp.float32)

    gen_user_pad, gen_item_pad = model_forward(packed, user_emb, item_content_emb)
    jax.block_until_ready((gen_user_pad, gen_item_pad))

    assert gen_user_pad.shape == (batch_users, H_PAD)
    assert gen_item_pad.shape == (batch_items, H_PAD)
    # Padded columns are exactly zero (zero-padded w2 columns and b2 entries).
    assert jnp.all(gen_user_pad[:, HIDDEN:] == 0.0)
    assert jnp.all(gen_item_pad[:, HIDDEN:] == 0.0)

    gen_user_emb = gen_user_pad[:, :HIDDEN]
    gen_item_emb = gen_item_pad[:, :HIDDEN]

    # (a) tight check vs. a reference that mirrors the kernel's bf16/f32 precision mix
    ref_user_bf = _reference_stream(user_emb, params["user_w1_t"], params["user_b1"],
                                    params["bn_gamma"], params["bn_beta"],
                                    params["user_wo_t"], params["user_bo"],
                                    match_kernel_precision=True)
    ref_item_bf = _reference_stream(item_content_emb, params["item_w1_t"],
                                    params["item_b1"], params["bn_gamma"],
                                    params["bn_beta"], params["item_wo_t"],
                                    params["item_bo"], match_kernel_precision=True)
    assert jnp.allclose(gen_user_emb, ref_user_bf, atol=2e-3, rtol=2e-3)
    assert jnp.allclose(gen_item_emb, ref_item_bf, atol=2e-3, rtol=2e-3)

    # (b) looser check vs. the full-f32 PyTorch-faithful reference (bf16 weight rounding)
    ref_user = _reference_stream(user_emb, params["user_w1_t"], params["user_b1"],
                                 params["bn_gamma"], params["bn_beta"],
                                 params["user_wo_t"], params["user_bo"])
    ref_item = _reference_stream(item_content_emb, params["item_w1_t"],
                                 params["item_b1"], params["bn_gamma"],
                                 params["bn_beta"], params["item_wo_t"],
                                 params["item_bo"])
    assert jnp.allclose(gen_user_emb, ref_user, atol=1e-1, rtol=1e-1)
    assert jnp.allclose(gen_item_emb, ref_item, atol=1e-1, rtol=1e-1)

    # TODO(synk): calcLoss / get_user_rating / get_ranked_rating (loss, sigmoid
    # rating matrix, top-k) and BN running-stat updates are not kernelized; only
    # the forward pass is implemented here.
    print("KERNEL_OK")
</pallas_src>

<mosaic_0001>
module attributes {stable_mosaic.version = 11 : i64} {
  func.func @_fused_stream_kernel(%arg0: i32, %arg1: memref<2xi32, #tpu.memory_space<smem>>, %arg2: memref<1x16x48xf32, #tpu.memory_space<vmem>>, %arg3: memref<1x48x256xbf16, #tpu.memory_space<vmem>>, %arg4: memref<1x8x256xf32, #tpu.memory_space<vmem>>, %arg5: memref<1x256x256xbf16, #tpu.memory_space<vmem>>, %arg6: memref<1x16x256xf32, #tpu.memory_space<vmem>>) attributes {dimension_semantics = [#tpu.dimension_semantics<arbitrary>], iteration_bounds = array<i64: 2>, scalar_prefetch = 1 : i64, scratch_operands = 0 : i64, tpu.core_type = #tpu.core_type<tc>, window_params = [{transform_indices = @transform_0, window_bounds = array<i64: 1, 16, 48>}, {transform_indices = @transform_1, window_bounds = array<i64: 1, 48, 256>}, {transform_indices = @transform_2, window_bounds = array<i64: 1, 8, 256>}, {transform_indices = @transform_3, window_bounds = array<i64: 1, 256, 256>}, {transform_indices = @transform_4, window_bounds = array<i64: 1, 16, 256>}]} {
    %0 = arith.index_cast %arg0 : i32 to index
    %1 = memref.load %arg1[%0] : memref<2xi32, #tpu.memory_space<smem>>
    %2 = arith.sitofp %1 : i32 to f32
    %cst = arith.constant 1.000000e+00 : f32
    %3 = arith.divf %cst, %2 : f32
    %c0 = arith.constant 0 : index
    %c0_0 = arith.constant 0 : index
    %c0_1 = arith.constant 0 : index
    %4 = vector.load %arg4[%c0, %c0_0, %c0_1] : memref<1x8x256xf32, #tpu.memory_space<vmem>>, vector<1x8x256xf32>
    %5 = vector.shape_cast %4 : vector<1x8x256xf32> to vector<8x256xf32>
    %6 = vector.extract_strided_slice %5 {offsets = [0, 0], sizes = [1, 256], strides = [1, 1]} : vector<8x256xf32> to vector<1x256xf32>
    %7 = vector.extract_strided_slice %5 {offsets = [1, 0], sizes = [1, 256], strides = [1, 1]} : vector<8x256xf32> to vector<1x256xf32>
    %8 = vector.extract_strided_slice %5 {offsets = [2, 0], sizes = [1, 256], strides = [1, 1]} : vector<8x256xf32> to vector<1x256xf32>
    %9 = vector.extract_strided_slice %5 {offsets = [3, 0], sizes = [1, 256], strides = [1, 1]} : vector<8x256xf32> to vector<1x256xf32>
    %c0_2 = arith.constant 0 : index
    %c0_3 = arith.constant 0 : index
    %c0_4 = arith.constant 0 : index
    %10 = vector.load %arg2[%c0_2, %c0_3, %c0_4] : memref<1x16x48xf32, #tpu.memory_space<vmem>>, vector<1x16x48xf32>
    %11 = vector.shape_cast %10 : vector<1x16x48xf32> to vector<16x48xf32>
    %12 = arith.truncf %11 : vector<16x48xf32> to vector<16x48xbf16>
    %c0_5 = arith.constant 0 : index
    %c0_6 = arith.constant 0 : index
    %c0_7 = arith.constant 0 : index
    %13 = vector.load %arg3[%c0_5, %c0_6, %c0_7] : memref<1x48x256xbf16, #tpu.memory_space<vmem>>, vector<1x48x256xbf16>
    %14 = vector.shape_cast %13 : vector<1x48x256xbf16> to vector<48x256xbf16>
    %cst_8 = arith.constant dense<0.000000e+00> : vector<16x256xf32>
    %15 = tpu.matmul %12, %14, %cst_8 {dimension_numbers = #tpu.dot_dimension_numbers<[1], [0], [0], [1], [0, 0, 1, 1], [], []>} : vector<16x48xbf16>, vector<48x256xbf16>, vector<16x256xf32> -> vector<16x256xf32>
    %16 = vector.broadcast %6 : vector<1x256xf32> to vector<16x256xf32>
    %17 = arith.addf %15, %16 : vector<16x256xf32>
    %18 = tpu.iota {dimensions = array<i32: 0>} : vector<16x1xi32>
    %19 = vector.broadcast %1 : i32 to vector<16x1xi32>
    %20 = arith.cmpi slt, %18, %19 : vector<16x1xi32>
    %21 = arith.extui %20 : vector<16x1xi1> to vector<16x1xi32>
    %22 = arith.sitofp %21 : vector<16x1xi32> to vector<16x1xf32>
    %23 = vector.broadcast %22 : vector<16x1xf32> to vector<16x256xf32>
    %24 = arith.mulf %17, %23 : vector<16x256xf32>
    %cst_9 = arith.constant dense<0.000000e+00> : vector<256xf32>
    %25 = vector.multi_reduction <add>, %24, %cst_9 [0] : vector<16x256xf32> to vector<256xf32>
    %26 = vector.shape_cast %25 : vector<256xf32> to vector<1x256xf32>
    %27 = vector.broadcast %3 : f32 to vector<1x256xf32>
    %28 = arith.mulf %26, %27 : vector<1x256xf32>
    %29 = vector.broadcast %28 : vector<1x256xf32> to vector<16x256xf32>
    %30 = arith.subf %17, %29 : vector<16x256xf32>
    %31 = vector.broadcast %22 : vector<16x1xf32> to vector<16x256xf32>
    %32 = arith.mulf %30, %31 : vector<16x256xf32>
    %33 = arith.mulf %32, %32 : vector<16x256xf32>
    %cst_10 = arith.constant dense<0.000000e+00> : vector<256xf32>
    %34 = vector.multi_reduction <add>, %33, %cst_10 [0] : vector<16x256xf32> to vector<256xf32>
    %35 = vector.shape_cast %34 : vector<256xf32> to vector<1x256xf32>
    %36 = vector.broadcast %3 : f32 to vector<1x256xf32>
    %37 = arith.mulf %35, %36 : vector<1x256xf32>
    %cst_11 = arith.constant 9.99999974E-6 : f32
    %38 = vector.broadcast %cst_11 : f32 to vector<1x256xf32>
    %39 = arith.addf %37, %38 : vector<1x256xf32>
    %40 = math.rsqrt %39 : vector<1x256xf32>
    %41 = arith.mulf %7, %40 : vector<1x256xf32>
    %42 = arith.mulf %28, %41 : vector<1x256xf32>
    %43 = arith.subf %8, %42 : vector<1x256xf32>
    %44 = vector.broadcast %41 : vector<1x256xf32> to vector<16x256xf32>
    %45 = arith.mulf %17, %44 : vector<16x256xf32>
    %46 = vector.broadcast %43 : vector<1x256xf32> to vector<16x256xf32>
    %47 = arith.addf %45, %46 : vector<16x256xf32>
    %48 = math.tanh %47 : vector<16x256xf32>
    %49 = arith.truncf %48 : vector<16x256xf32> to vector<16x256xbf16>
    %c0_12 = arith.constant 0 : index
    %c0_13 = arith.constant 0 : index
    %c0_14 = arith.constant 0 : index
    %50 = vector.load %arg5[%c0_12, %c0_13, %c0_14] : memref<1x256x256xbf16, #tpu.memory_space<vmem>>, vector<1x256x256xbf16>
    %51 = vector.shape_cast %50 : vector<1x256x256xbf16> to vector<256x256xbf16>
    %cst_15 = arith.constant dense<0.000000e+00> : vector<16x256xf32>
    %52 = tpu.matmul %49, %51, %cst_15 {dimension_numbers = #tpu.dot_dimension_numbers<[1], [0], [0], [1], [0, 0, 1, 1], [], []>} : vector<16x256xbf16>, vector<256x256xbf16>, vector<16x256xf32> -> vector<16x256xf32>
    %53 = vector.broadcast %9 : vector<1x256xf32> to vector<16x256xf32>
    %54 = arith.addf %52, %53 : vector<16x256xf32>
    %c0_16 = arith.constant 0 : index
    %c0_17 = arith.constant 0 : index
    %c0_18 = arith.constant 0 : index
    %55 = vector.load %arg6[%c0_16, %c0_17, %c0_18] : memref<1x16x256xf32, #tpu.memory_space<vmem>>, vector<1x16x256xf32>
    %56 = vector.shape_cast %55 : vector<1x16x256xf32> to vector<16x256xf32>
    %57 = vector.shape_cast %54 : vector<16x256xf32> to vector<1x16x256xf32>
    tpu.vector_store %arg6[%c0_16, %c0_17, %c0_18], %57 {strides = array<i32>} : memref<1x16x256xf32, #tpu.memory_space<vmem>>, vector<1x16x256xf32>,
    return
  }
  func.func @transform_0(%arg0: i32, %arg1: memref<2xi32, #tpu.memory_space<smem>>) -> (i32, i32, i32) {
    %c0_i32 = arith.constant 0 : i32
    %c0_i32_0 = arith.constant 0 : i32
    %c0_i32_1 = arith.constant 0 : i32
    return %arg0, %c0_i32, %c0_i32_0 : i32, i32, i32
  }
  func.func @transform_1(%arg0: i32, %arg1: memref<2xi32, #tpu.memory_space<smem>>) -> (i32, i32, i32) {
    %c0_i32 = arith.constant 0 : i32
    %c0_i32_0 = arith.constant 0 : i32
    %c0_i32_1 = arith.constant 0 : i32
    return %arg0, %c0_i32, %c0_i32_0 : i32, i32, i32
  }
  func.func @transform_2(%arg0: i32, %arg1: memref<2xi32, #tpu.memory_space<smem>>) -> (i32, i32, i32) {
    %c0_i32 = arith.constant 0 : i32
    %c0_i32_0 = arith.constant 0 : i32
    %c0_i32_1 = arith.constant 0 : i32
    return %arg0, %c0_i32, %c0_i32_0 : i32, i32, i32
  }
  func.func @transform_3(%arg0: i32, %arg1: memref<2xi32, #tpu.memory_space<smem>>) -> (i32, i32, i32) {
    %c0_i32 = arith.constant 0 : i32
    %c0_i32_0 = arith.constant 0 : i32
    %c0_i32_1 = arith.constant 0 : i32
    return %arg0, %c0_i32, %c0_i32_0 : i32, i32, i32
  }
  func.func @transform_4(%arg0: i32, %arg1: memref<2xi32, #tpu.memory_space<smem>>) -> (i32, i32, i32) {
    %c0_i32 = arith.constant 0 : i32
    %c0_i32_0 = arith.constant 0 : i32
    %c0_i32_1 = arith.constant 0 : i32
    return %arg0, %c0_i32, %c0_i32_0 : i32, i32, i32
  }
}

</mosaic_0001>

<bundles_post_ra>
// kernel: tpu_custom_call.1
= control target key start
LH: loop header
LB: loop body
LE: loop exit
PB: predicated region body
PF: predicated region fallthrough
CT: control target
= control target key end

     0   :  { %s1351_s18 = smov [#allocation3]   ;;  %s1755_s0 = inlined_call_operand.hbm [shape: s32[2], index: 0, kind: input, shape index: {}]   ;;  %s1756_s1 = inlined_call_operand.hbm [shape: f32[2,16,48], index: 1, kind: input, shape index: {}]   ;;  %s1757_s2 = inlined_call_operand.hbm [shape: bf16[2,48,256], index: 2, kind: input, shape index: {}]   ;;  %s1758_s3 = inlined_call_operand.hbm [shape: f32[2,8,256], index: 3, kind: input, shape index: {}]   ;;  %s1759_s4 = inlined_call_operand.hbm [shape: bf16[2,256,256], index: 4, kind: input, shape index: {}]   ;;  %s1760_s5 = inlined_call_operand.hbm [shape: f32[2,16,256], index: 5, kind: output, shape index: {}]  }
   0x1   :  { %1769 = sst [smem:[#allocation22_spill]] %s1756_s1 }
   0x2   :  { %1770 = sst [smem:[#allocation23_spill]] %s1757_s2 }
   0x3   :  { %11 = dma.hbm_to_smem %s1755_s0, 16, %s1351_s18, [#allocation2] }
   0x4   :  { %1317 = dma.done.wait [#allocation2], 16 }
   0x5   :  { %1318 = vsyncadd [#allocation2], 4294967280 }
   0x6   :  { %13 = sfence }
   0x7   :  { %14 = vsyncpa [#allocation5], 0 }
   0x8   :  { %16 = vsyncpa [#allocation5 + $0x1], 0 }
   0x9   :  { %17 = vsyncpa [#allocation8], 0 }
   0xa   :  { %19 = vsyncpa [#allocation8 + $0x1], 0 }
   0xb   :  { %20 = vsyncpa [#allocation11], 0 }
   0xc   :  { %22 = vsyncpa [#allocation11 + $0x1], 0 }
   0xd   :  { %23 = vsyncpa [#allocation6], 0 }
   0xe   :  { %25 = vsyncpa [#allocation6 + $0x1], 0  ;;  %s1396_s21 = smov 0   ;;  %s1398_s22 = smov 0  }
   0xf   :  { %s1400_s23 = smov 0   ;;  %s1402_s24 = smov 0  }
  0x10 LB: > { %1771 = sst [smem:[#allocation18_spill]] %s1345_s23  ;;  %s1417_s0 = sadd.s32 4294967295, %s1349_s24   ;;  %s1349_s24 = sphi %s1402_s24, %s1791_s24   ;;  %s1345_s23 = sphi %s1400_s23, %s1793_s23   ;;  %s1341_s22 = sphi %s1398_s22, %s1795_s22   ;;  %s1337_s21 = sphi %s1396_s21, %s1794_s21  }
  0x11   : > { %s943_s25 = sadd.s32 4294967294, %s1349_s24   ;;  %s1421_s26 = sadd.s32 1, %s1349_s24  }
  0x12   : > { %1772 = sst [smem:[#allocation19_spill]] %s1421_s26  ;;  %s38_s27 = sadd.s32 1, %s1345_s23 }
  0x13   : > { %s35_s28 = ssub.s32 %s1349_s24, %s1421_s26  ;;  %p45_p0 = scmp.ne.s32.totalorder %s1345_s23, %s1341_s22 }
  0x14   : > { %p36_p1 = scmp.eq.s32.totalorder %s35_s28, 0  ;;  %p46_p2 = scmp.eq.s32.totalorder %s1349_s24, 0 }
  0x15   : > { %p51_p3 = scmp.ne.s32.totalorder %s1341_s22, %s1337_s21  ;;  %p52_p4 = scmp.eq.s32.totalorder %s1417_s0, 0 }
  0x16   : > { %s1433_s29 = scalar_select %p36_p1, %s1345_s23, %s38_s27  }
  0x17   : > { %p47_p5 = por %p46_p2, %p45_p0  ;;  %p1435_p6 = por %p52_p4, %p51_p3 }
  0x18   : > { %1773 = sst [smem:[#allocation20_spill]] %s1433_s29  ;;  %p153_p7 = scmp.eq.s32.totalorder %s1417_s0, 1 }
  0x19   : > { %s1774_s30 = scalar_select %p1435_p6, 1, 0 }
  0x1a   : > { %p159_p8 = scmp.eq.s32.totalorder %s943_s25, 1  ;;  %p1043_p10 = scmp.lt.s32.totalorder %s1349_s24, 2 }
  0x1b   : > { %p1442_p11 = por %p153_p7, %p45_p0  ;;  %s1451_s8 = sand.u32 1, %s1345_s23  }
  0x1c   : > { %p1446_p12 = por %p159_p8, %p51_p3  ;;  %p1453_p13 = pnand %p1043_p10, %p47_p5 }
  0x1d   : > { %s1775_s6 = scalar_select %p1442_p11, 1, 0 }
  0x1e   : > { %s1776_s7 = scalar_select %p1446_p12, 1, 0 }
  0x1f   : > { %s200_s10 = sand.u32 1, %s1349_s24   ;;  %s1011_s11 = smul.u32 48, %s1451_s8 }
  0x20   : > { %1777 = sst [smem:[#allocation21_spill]] %s1776_s7  ;;  %s1012_s12 = smul.u32 768, %s1349_s24 }
  0x21   : > { %p956_p1 = scmp.ge.s32.totalorder %s1349_s24, 1  ;;  %p259_p0 = scmp.lt.s32.totalorder %s1349_s24, 3 }
  0x22   : > { %s1779_s2 = sld [smem:[#allocation23_spill]]  ;;  %s204_s16 = scalar_lea.vmem [#allocation7], %s1011_s11 }
  0x23   : > { %s211_s17 = sshll.u32 %s204_s16, 4  ;;  %p1469_p2 = pnand %p956_p1, %p259_p0  ;;  %s1467_s17 = int_to_ptr.vmem [resolvable:$true] %s211_s17 }
  0x24   : > { %s1473_s19 = scalar_lea.sflag [#allocation8], %s200_s10  ;;  %p1479_p4 = pneg %p1453_p13 }
  0x25   : > { %s1780_s18 = scalar_select %p1469_p2, 1, 0 }
  0x28   : > { %s1465_s15 = scalar_lea.hbm %s1779_s2, %s1012_s12  ;;  %s1168_s11 = scalar_lea.hbm %s1779_s2, 1536 }
  0x29   : > { %s1163_s20 = scalar_lea.hbm %s1465_s15, 768  ;;  %p1169_p8 = scmp.lt.s32.totalorder %s1465_s15, %s1779_s2 }
  0x2a   : > { %p1164_p3 = scmp.ne.s32.totalorder %s1465_s15, %s1163_s20  ;;  %p1170_p10 = scmp.lt.s32.totalorder %s1168_s11, %s1163_s20 }
  0x2c   : > { %p1166_p5 = pnand %p1479_p4, %p1164_p3  ;;  %p1171_p1 = por %p1170_p10, %p1169_p8 }
  0x2e   : > { %p1167_p7 = pneg %p1166_p5 }
  0x30   : > { %p1172_p0 = pnand %p1171_p1, %p1167_p7 }
  0x32   : > { %1175 = shalt.err (!%p1172_p0)
}
  0x33   : > { %s1176_s10 = scalar_lea.vmem %s1467_s17, 768  ;;  %s1352_s14 = smov [#allocation7]  }
  0x34   : > { %p1177_p9 = scmp.ne.s32.totalorder %s1467_s17, %s1176_s10  ;;  %s1181_s16 = sshll.u32 %s1352_s14, 4  ;;  %s1182_s16 = int_to_ptr.vmem [resolvable:$false] %s1181_s16 }
  0x35   : > { %s1183_s27 = scalar_lea.vmem %s1182_s16, 1536  ;;  %p1184_p12 = scmp.lt.s32.totalorder %s1467_s17, %s1182_s16 }
  0x36   : > { %p1179_p3 = pnand %p1177_p9, %p1479_p4  ;;  %p1185_p11 = scmp.lt.s32.totalorder %s1183_s27, %s1176_s10 }
  0x38   : > { %p1180_p5 = pneg %p1179_p3  ;;  %p1186_p6 = por %p1185_p11, %p1184_p12 }
  0x3a   : > { %p1187_p2 = pnand %p1186_p6, %p1180_p5 }
  0x3c   : > { %1190 = shalt.err (!%p1187_p2)
}
  0x3d   : > { %s1353_s20 = smov 128   ;;  %s1354_s28 = smov 8  }
  0x3e   : > { %1032 = dma.hbm_to_vmem [thread:$0]  (!%p1453_p13), %s1465_s15, 768, %s1467_s17, %s1473_s19, %s1353_s20, %s1353_s20, %s1354_s28  }
  0x3f   : > { %s1764_s11 = sshll.u32 %s1451_s8, 4  ;;  %s1763_s12 = sshll.u32 %s1349_s24, 8 }
  0x40   : > { %s1782_s1 = sld [smem:[#allocation22_spill]]  ;;  %s183_s16 = scalar_lea.vmem [#allocation4], %s1764_s11 }
  0x41   : > { %s190_s27 = sshll.u32 %s183_s16, 4  ;;  %s180_s2 = scalar_lea.sflag [#allocation5], %s1451_s8  ;;  %s1516_s27 = int_to_ptr.vmem [resolvable:$true] %s190_s27 }
  0x46   : > { %s1512_s14 = scalar_lea.hbm %s1782_s1, %s1763_s12  ;;  %s1196_s13 = scalar_lea.hbm %s1782_s1, 512 }
  0x47   : > { %s1191_s29 = scalar_lea.hbm %s1512_s14, 256  ;;  %p1197_p12 = scmp.lt.s32.totalorder %s1512_s14, %s1782_s1 }
  0x48   : > { %p1192_p6 = scmp.ne.s32.totalorder %s1512_s14, %s1191_s29  ;;  %p1198_p2 = scmp.lt.s32.totalorder %s1196_s13, %s1191_s29 }
  0x4a   : > { %p1194_p9 = pnand %p1192_p6, %p1479_p4  ;;  %p1199_p7 = por %p1198_p2, %p1197_p12 }
  0x4c   : > { %p1195_p11 = pneg %p1194_p9 }
  0x4e   : > { %p1200_p8 = pnand %p1199_p7, %p1195_p11 }
  0x50   : > { %1203 = shalt.err (!%p1200_p8)
}
  0x51   : > { %s1204_s16 = scalar_lea.vmem %s1516_s27, 256  ;;  %s1355_s11 = smov [#allocation4]  }
  0x52   : > { %p1205_p10 = scmp.ne.s32.totalorder %s1516_s27, %s1204_s16  ;;  %s1209_s15 = sshll.u32 %s1355_s11, 4  ;;  %s1210_s15 = int_to_ptr.vmem [resolvable:$false] %s1209_s15 }
  0x53   : > { %s1211_s17 = scalar_lea.vmem %s1210_s15, 512  ;;  %p1212_p3 = scmp.lt.s32.totalorder %s1516_s27, %s1210_s15 }
  0x54   : > { %p1207_p1 = pnand %p1205_p10, %p1479_p4  ;;  %p1213_p5 = scmp.lt.s32.totalorder %s1211_s17, %s1204_s16 }
  0x56   : > { %p1208_p0 = pneg %p1207_p1  ;;  %p1214_p6 = por %p1213_p5, %p1212_p3 }
  0x58   : > { %p1215_p9 = pnand %p1214_p6, %p1208_p0 }
  0x5a   : > { %1218 = shalt.err (!%p1215_p9)
}
  0x5b   : > { %1029 = dma.hbm_to_vmem [thread:$0]  (!%p1453_p13), %s1512_s14, 256, %s1516_s27, %s180_s2, %s1353_s20, %s1353_s20, %s1354_s28  }
  0x5c   : > { %s1783_s29 = sshll.u32 %s1349_s24, 8  ;;  %s1784_s10 = sshll.u32 %s1451_s8, 4 }
  0x5d   : > { %s231_s13 = scalar_lea.hbm %s1758_s3, %s1783_s29  ;;  %s225_s16 = scalar_lea.vmem [#allocation9], %s1784_s10 }
  0x5e   : > { %s233_s15 = sshll.u32 %s225_s16, 4  ;;  %s1219_s17 = scalar_lea.hbm %s231_s13, 256  ;;  %s234_s15 = int_to_ptr.vmem [resolvable:$true] %s233_s15 }
  0x5f   : > { %p1220_p11 = scmp.ne.s32.totalorder %s231_s13, %s1219_s17  ;;  %s1224_s26 = scalar_lea.hbm %s1758_s3, 512 }
  0x60   : > { %p1225_p7 = scmp.lt.s32.totalorder %s231_s13, %s1758_s3  ;;  %p1226_p8 = scmp.lt.s32.totalorder %s1224_s26, %s1219_s17 }
  0x61   : > { %p1222_p12 = pnand %p1220_p11, %p1479_p4 }
  0x62   : > { %p1227_p10 = por %p1226_p8, %p1225_p7 }
  0x63   : > { %p1223_p2 = pneg %p1222_p12 }
  0x65   : > { %p1228_p1 = pnand %p1227_p10, %p1223_p2 }
  0x67   : > { %1231 = shalt.err (!%p1228_p1)
}
  0x68   : > { %s1232_s14 = scalar_lea.vmem %s234_s15, 256  ;;  %s1356_s27 = smov [#allocation9]  }
  0x69   : > { %p1233_p0 = scmp.ne.s32.totalorder %s234_s15, %s1232_s14  ;;  %s1237_s29 = sshll.u32 %s1356_s27, 4  ;;  %s1238_s29 = int_to_ptr.vmem [resolvable:$false] %s1237_s29 }
  0x6a   : > { %s1239_s11 = scalar_lea.vmem %s1238_s29, 512  ;;  %p1240_p6 = scmp.lt.s32.totalorder %s234_s15, %s1238_s29 }
  0x6b   : > { %p1235_p3 = pnand %p1233_p0, %p1479_p4  ;;  %p1241_p9 = scmp.lt.s32.totalorder %s1239_s11, %s1232_s14 }
  0x6d   : > { %p1236_p5 = pneg %p1235_p3  ;;  %p1242_p11 = por %p1241_p9, %p1240_p6 }
  0x6f   : > { %p1243_p12 = pnand %p1242_p11, %p1236_p5 }
  0x71   : > { %1246 = shalt.err (!%p1243_p12)
}
  0x72   : > { %1035 = dma.hbm_to_vmem [thread:$0]  (!%p1453_p13), %s231_s13, 256, %s234_s15, %s1473_s19  }
  0x73   : > { %s953_s1 = sshll.u32 %s1451_s8, 8  ;;  %s1009_s23 = sshll.u32 %s1349_s24, 12 }
  0x74   : > { %s1567_s12 = scalar_lea.hbm %s1759_s4, %s1009_s23  ;;  %s244_s10 = scalar_lea.vmem [#allocation10], %s953_s1 }
  0x75   : > { %s251_s16 = sshll.u32 %s244_s10, 4  ;;  %s241_s17 = scalar_lea.sflag [#allocation11], %s1451_s8  ;;  %s1569_s16 = int_to_ptr.vmem [resolvable:$true] %s251_s16 }
  0x76   : > { %s1247_s2 = scalar_lea.hbm %s1567_s12, 4096  ;;  %s1252_s15 = scalar_lea.hbm %s1759_s4, 8192 }
  0x77   : > { %p1248_p2 = scmp.ne.s32.totalorder %s1567_s12, %s1247_s2  ;;  %p1253_p10 = scmp.lt.s32.totalorder %s1567_s12, %s1759_s4 }
  0x78   : > { %p1254_p1 = scmp.lt.s32.totalorder %s1252_s15, %s1247_s2 }
  0x79   : > { %p1250_p7 = pnand %p1248_p2, %p1479_p4 }
  0x7a   : > { %p1255_p0 = por %p1254_p1, %p1253_p10 }
  0x7b   : > { %p1251_p8 = pneg %p1250_p7 }
  0x7d   : > { %p1256_p3 = pnand %p1255_p0, %p1251_p8 }
  0x7f   : > { %1259 = shalt.err (!%p1256_p3)
}
  0x80   : > { %s1260_s8 = scalar_lea.vmem %s1569_s16, 4096  ;;  %s1357_s29 = smov [#allocation10]  }
  0x81   : > { %p1261_p5 = scmp.ne.s32.totalorder %s1569_s16, %s1260_s8  ;;  %s1265_s11 = sshll.u32 %s1357_s29, 4  ;;  %s1266_s11 = int_to_ptr.vmem [resolvable:$false] %s1265_s11 }
  0x82   : > { %s1267_s1 = scalar_lea.vmem %s1266_s11, 8192  ;;  %p1268_p11 = scmp.lt.s32.totalorder %s1569_s16, %s1266_s11 }
  0x83   : > { %p1263_p6 = pnand %p1261_p5, %p1479_p4  ;;  %p1269_p12 = scmp.lt.s32.totalorder %s1267_s1, %s1260_s8 }
  0x85   : > { %p1264_p9 = pneg %p1263_p6  ;;  %p1270_p2 = por %p1269_p12, %p1268_p11 }
  0x87   : > { %p1271_p7 = pnand %p1270_p2, %p1264_p9 }
  0x89   : > { %1274 = shalt.err (!%p1271_p7)
}
  0x8a   : > { %1038 = dma.hbm_to_vmem [thread:$0]  (!%p1453_p13), %s1567_s12, 4096, %s1569_s16, %s241_s17, %s1353_s20, %s1353_s20, %s1354_s28  }
  0x8b   : > { %p1785_p4 = scmp.ne.s32.totalorder %s1780_s18, 0 }
  0x8c   : > { %s1598_s25 = sand.u32 (!%p1785_p4), 1, %s1341_s22   ;;  %p1786_p8 = scmp.ne.s32.totalorder (!%p1785_p4), %s1774_s30, 0 }
  0x8d   : > { %263 = sbr.rel (%p1785_p4) target bundleno = 669 (0x29d), region = 36  ;;  %s957_s23 = sshll.u32 (!%p1785_p4), %s1598_s25, 4 }
  0x8e   : > { %s266_s26 = scalar_lea.sflag (!%p1785_p4), [#allocation5], %s1598_s25  ;;  %s1602_s7 = scalar_lea.vmem (!%p1785_p4), [#allocation4], %s957_s23 }
  0x92   : > { %1320 = dma.done.wait (%p1786_p8), %s266_s26, 256  }
  0x93   : > { %1322 = vsyncadd (%p1786_p8), %s266_s26, 4294967040  ;;  %s274_s9 = sand.u32 1, %s1417_s0   ;;  %s1013_s18 = smul.u32 48, %s1598_s25 }
  0x94   : > { %s275_s20 = scalar_lea.sflag [#allocation8], %s274_s9 }
  0x95   : > { %s278_s28 = scalar_lea.vmem [#allocation7], %s1013_s18 }
  0x96   : > { %1324 = dma.done.wait (%p1786_p8), %s275_s20, 1024  }
  0x97   : > { %1326 = vsyncadd (%p1786_p8), %s275_s20, 4294966272  ;;  %s959_s12 = sshll.u32 %s1598_s25, 8  ;;  %s1615_s10 = scalar_lea.vmem [#allocation9], %s957_s23 }
  0x98   : > { %s293_s16 = scalar_lea.sflag [#allocation11], %s1598_s25  ;;  %s1618_s17 = scalar_lea.vmem [#allocation10], %s959_s12 }
  0x99   : > { %1328 = dma.done.wait (%p1786_p8), %s293_s16, 4096  }
  0x9a   : > { %1330 = vsyncadd (%p1786_p8), %s293_s16, 4294963200  ;;  %v1358_v0 = vmov 0   ;;  %s1625_s2 = sld [smem:[#allocation3 + %s1417_s0]]  ;;  %v1084_v1 = vld [vmem:[%s278_s28 + $0x24] ss:$8 sps:$4 sm:$0xff]   ;;  %vm391_vm0 = vcmask 392192   ;;  %v353_v44 = vlaneseq }
  0x9b   : > { %427 = vmatprep.mubr.bf16.mxu0 %v1358_v0  ;;  %v1086_v2 = vld [vmem:[%s278_s28 + $0x20] ss:$8 sps:$4 sm:$0xff]   ;;  %405 = vmatprep.subr.bf16.mxu0 %v1084_v1  ;;  %v1087_v3 = vld [vmem:[%s278_s28 + $0x14] ss:$8 sps:$4 sm:$0xff]   ;;  %v1089_v5 = vld [vmem:[%s278_s28 + $0x10] ss:$8 sps:$4 sm:$0xff]  }
  0x9c   : > { %406 = vmatpush1.bf16.msra.mxu0 %v1086_v2  ;;  %v1090_v6 = vld [vmem:[%s278_s28 + $0x4] ss:$8 sps:$4 sm:$0xff]   ;;  %v1092_v7 = vld [vmem:[%s278_s28] ss:$8 sps:$4 sm:$0xff]   ;;  %v1662_v45 = vshrl.u32 %v353_v44, 7  ;;  %v1359_v56 = vmov 0.0  }
  0x9d   : > { %407 = vmatprep.subr.bf16.mxu0 %v1087_v3  ;;  %v344_v8 = vld [vmem:[%s1602_s7] sm:$0xff]  ;;  %v345_v9 = vld [vmem:[%s1602_s7 + $0x8] sm:$0xff]  ;;  %s960_s13 = sshll.u32 %s1598_s25, 5  ;;  %s1010_s27 = sshll.u32 %s1417_s0, 9 }
  0x9e   : > { %v346_v10 = vpack.c.bf16 %v345_v9, %v344_v8  ;;  %v1093_v12 = vld [vmem:[%s1618_s17 + $0x74] ss:$8 sps:$4 sm:$0xff]   ;;  %v1095_v13 = vld [vmem:[%s1618_s17 + $0x70] ss:$8 sps:$4 sm:$0xff]   ;;  %v1096_v14 = vld [vmem:[%s1618_s17 + $0x64] ss:$8 sps:$4 sm:$0xff]   ;;  %s1712_s11 = scalar_lea.hbm %s1760_s5, %s1010_s27 }
  0x9f   : > { %743 = vmatprep.subr.bf16.mxu1 %v1093_v12  ;;  %v1098_v15 = vld [vmem:[%s1618_s17 + $0x60] ss:$8 sps:$4 sm:$0xff]   ;;  %v1099_v16 = vld [vmem:[%s1618_s17 + $0x54] ss:$8 sps:$4 sm:$0xff]   ;;  %v1101_v17 = vld [vmem:[%s1618_s17 + $0x50] ss:$8 sps:$4 sm:$0xff]  }
  0xa0   : > { %s338_s19 = scvt.s32.f32 %s1625_s2  ;;  %408 = vmatpush1.bf16.msra.mxu0 %v1089_v5  ;;  %744 = vmatpush1.bf16.msra.mxu1 %v1095_v13  ;;  %v1102_v18 = vld [vmem:[%s1618_s17 + $0x44] ss:$8 sps:$4 sm:$0xff]   ;;  %v1104_v19 = vld [vmem:[%s1618_s17 + $0x40] ss:$8 sps:$4 sm:$0xff]   ;;  %v1105_v20 = vld [vmem:[%s1618_s17 + $0x34] ss:$8 sps:$4 sm:$0xff]   ;;  %v441_v49 = vstv %s1625_s2 }
  0xa1   : > { %409 = vmatprep.subr.bf16.mxu0 %v1090_v6  ;;  %745 = vmatprep.subr.bf16.mxu1 %v1096_v14  ;;  %v1107_v21 = vld [vmem:[%s1618_s17 + $0x30] ss:$8 sps:$4 sm:$0xff]   ;;  %v1108_v22 = vld [vmem:[%s1618_s17 + $0x24] ss:$8 sps:$4 sm:$0xff]   ;;  %v1110_v23 = vld [vmem:[%s1618_s17 + $0x20] ss:$8 sps:$4 sm:$0xff]   ;;  %vm442_vm1 = vcmp.lt.s32.totalorder %v1662_v45, %v441_v49 }
  0xa2   : > { %v339_v4 = vstv %s338_s19  ;;  %v1111_v24 = vld [vmem:[%s1618_s17 + $0x14] ss:$8 sps:$4 sm:$0xff]   ;;  %v1113_v25 = vld [vmem:[%s1618_s17 + $0x10] ss:$8 sps:$4 sm:$0xff]   ;;  %v1114_v26 = vld [vmem:[%s1618_s17 + $0x4] ss:$8 sps:$4 sm:$0xff]  }
  0xa3   : > { %1141 = vrcp.f32 %v339_v4  ;;  %v1116_v27 = vld [vmem:[%s1618_s17] ss:$8 sps:$4 sm:$0xff]   ;;  %v1117_v28 = vld [vmem:[%s1618_s17 + $0xf4] ss:$8 sps:$4 sm:$0xff]   ;;  %v1119_v29 = vld [vmem:[%s1618_s17 + $0xf0] ss:$8 sps:$4 sm:$0xff]  }
  0xa4   : > { %410 = vmatpush1.bf16.msra.mxu0 %v1092_v7  ;;  %746 = vmatpush1.bf16.msra.mxu1 %v1098_v15  ;;  %v1120_v30 = vld [vmem:[%s1618_s17 + $0xe4] ss:$8 sps:$4 sm:$0xff]   ;;  %v1122_v31 = vld [vmem:[%s1618_s17 + $0xe0] ss:$8 sps:$4 sm:$0xff]   ;;  %v1123_v32 = vld [vmem:[%s1618_s17 + $0xd4] ss:$8 sps:$4 sm:$0xff]  }
  0xa5   : > { %747 = vmatprep.subr.bf16.mxu1 %v1099_v16  ;;  %v1125_v33 = vld [vmem:[%s1618_s17 + $0xd0] ss:$8 sps:$4 sm:$0xff]   ;;  %v1126_v34 = vld [vmem:[%s1618_s17 + $0xc4] ss:$8 sps:$4 sm:$0xff]   ;;  %v1128_v35 = vld [vmem:[%s1618_s17 + $0xc0] ss:$8 sps:$4 sm:$0xff]  }
  0xa6   : > { %v1129_v36 = vld [vmem:[%s1618_s17 + $0xb4] ss:$8 sps:$4 sm:$0xff]   ;;  %v1131_v37 = vld [vmem:[%s1618_s17 + $0xb0] ss:$8 sps:$4 sm:$0xff]   ;;  %v1132_v38 = vld [vmem:[%s1618_s17 + $0xa4] ss:$8 sps:$4 sm:$0xff]  }
  0xa7   : > { %967 = vmatmul.mubr.msk.bf16.vlgmr.msra.gmra.mxu0 %vm391_vm0, %v346_v10  ;;  %v1134_v39 = vld [vmem:[%s1618_s17 + $0xa0] ss:$8 sps:$4 sm:$0xff]   ;;  %v1135_v40 = vld [vmem:[%s1618_s17 + $0x94] ss:$8 sps:$4 sm:$0xff]   ;;  %v1137_v41 = vld [vmem:[%s1618_s17 + $0x90] ss:$8 sps:$4 sm:$0xff]  }
  0xa8   : > { %748 = vmatpush1.bf16.msra.mxu1 %v1101_v17  ;;  %v1138_v42 = vld [vmem:[%s1618_s17 + $0x84] ss:$8 sps:$4 sm:$0xff]   ;;  %v1140_v43 = vld [vmem:[%s1618_s17 + $0x80] ss:$8 sps:$4 sm:$0xff]   ;;  %v355_v46 = vsub.s32 0, %v1662_v45  ;;  %v440_v48 = vadd.s32 8, %v1662_v45 }
  0xa9   : > { %749 = vmatprep.subr.bf16.mxu1 %v1102_v18  ;;  %v1666_v47 = vld [vmem:[%s1615_s10] sm:$0xff]  ;;  %v1671_v50 = vld [vmem:[%s1615_s10 + $0x8] sm:$0xff]  ;;  %v968_v57 = vsel %vm442_vm1, 1.0, %v1359_v56  ;;  %s335_s15 = scalar_lea.vmem [#allocation12], %s960_s13  ;;  %s791_s1 = scalar_lea.sflag [#allocation6], %s1598_s25 }
  0xaa   : > { %v356_v51 = vrot.slane %v1666_v47, %v355_v46  ;;  %v360_v53 = vrot.slane %v1671_v50, %v355_v46  ;;  %vm443_vm2 = vcmp.lt.s32.totalorder %v440_v48, %v441_v49  ;;  %s804_s14 = sshll.u32 %s335_s15, 4  ;;  %p1787_p10 = scmp.ne.s32.totalorder %s1775_s6, 0  ;;  %s1707_s14 = int_to_ptr.vmem [resolvable:$true] %s804_s14 }
  0xab   : > { %v969_v59 = vsel %vm443_vm2, 1.0, %v1359_v56  ;;  %s1275_s23 = scalar_lea.vmem %s1707_s14, 512  ;;  %s1360_s0 = smov [#allocation12]  }
  0xac   : > { %750 = vmatpush1.bf16.msra.mxu1 %v1104_v19  ;;  %p1276_p13 = scmp.ne.s32.totalorder %s1707_s14, %s1275_s23  ;;  %s1279_s26 = sshll.u32 %s1360_s0, 4  ;;  %s1280_s26 = int_to_ptr.vmem [resolvable:$false] %s1279_s26 }
  0xad   : > { %751 = vmatprep.subr.bf16.mxu1 %v1105_v20  ;;  %s1281_s7 = scalar_lea.vmem %s1280_s26, 1024  ;;  %p1282_p3 = scmp.lt.s32.totalorder %s1707_s14, %s1280_s26 }
  0xae   : > { %p1277_p1 = pnand %p1276_p13, %p1787_p10  ;;  %p1283_p5 = scmp.lt.s32.totalorder %s1281_s7, %s1275_s23 }
  0xb0   : > { %v1142_v11 = vpop.eup %1141  ;;  %752 = vmatpush1.bf16.msra.mxu1 %v1107_v21  ;;  %p1278_p0 = pneg %p1277_p1  ;;  %p1284_p6 = por %p1283_p5, %p1282_p3 }
  0xb1   : > { %1014 = vpush %v1142_v11  ;;  %753 = vmatprep.subr.bf16.mxu1 %v1108_v22 }
  0xb2   : > { %p1285_p9 = pnand %p1284_p6, %p1278_p0 }
  0xb4   : > { %754 = vmatpush1.bf16.msra.mxu1 %v1110_v23 }
  0xb5   : > { %755 = vmatprep.subr.bf16.mxu1 %v1111_v24 }
  0xb8   : > { %756 = vmatpush1.bf16.msra.mxu1 %v1113_v25 }
  0xb9   : > { %757 = vmatprep.subr.bf16.mxu1 %v1114_v26 }
  0xbc   : > { %758 = vmatpush1.bf16.msra.mxu1 %v1116_v27 }
  0xbd   : > { %759 = vmatprep.subr.bf16.mxu1 %v1117_v28 }
  0xc0   : > { %760 = vmatpush2.bf16.msra.mxu1 %v1119_v29 }
  0xc1   : > { %761 = vmatprep.subr.bf16.mxu1 %v1120_v30 }
  0xc4   : > { %762 = vmatpush2.bf16.msra.mxu1 %v1122_v31 }
  0xc5   : > { %763 = vmatprep.subr.bf16.mxu1 %v1123_v32 }
  0xc8   : > { %764 = vmatpush2.bf16.msra.mxu1 %v1125_v33 }
  0xc9   : > { %765 = vmatprep.subr.bf16.mxu1 %v1126_v34 }
  0xcc   : > { %766 = vmatpush2.bf16.msra.mxu1 %v1128_v35 }
  0xcd   : > { %767 = vmatprep.subr.bf16.mxu1 %v1129_v36 }
  0xd0   : > { %768 = vmatpush2.bf16.msra.mxu1 %v1131_v37 }
  0xd1   : > { %769 = vmatprep.subr.bf16.mxu1 %v1132_v38 }
  0xd4   : > { %770 = vmatpush2.bf16.msra.mxu1 %v1134_v39 }
  0xd5   : > { %771 = vmatprep.subr.bf16.mxu1 %v1135_v40 }
  0xd8   : > { %772 = vmatpush2.bf16.msra.mxu1 %v1137_v41 }
  0xd9   : > { %773 = vmatprep.subr.bf16.mxu1 %v1138_v42 }
  0xdc   : > { %774 = vmatpush2.bf16.msra.mxu1 %v1140_v43 }
  0xe2   : > { %s1015_s30 = spop %1014 }
  0xe3   : > { %v466_v15 = vstv %s1015_s30 }
 0x167   : > { %v429_v52 = vpop.f32.mrf.mxu0 }
 0x168   : > { %v1676_v55 = vadd.f32 %v429_v52, %v356_v51 }
 0x169   : > { %v431_v54 = vpop.f32.mrf.mxu0 }
 0x16a   : > { %v1678_v60 = vadd.f32 %v431_v54, %v360_v53  ;;  %v448_v63 = vmul.f32 %v968_v57, %v1676_v55 }
 0x16b   : > { %v433_v58 = vpop.f32.mrf.mxu0 }
 0x16c   : > { %v1680_v61 = vadd.f32 %v433_v58, %v356_v51  ;;  %v449_v2 = vmul.f32 %v968_v57, %v1678_v60 }
 0x16d   : > { %v435_v62 = vpop.f32.mrf.mxu0 }
 0x16e   : > { %v450_v0 = vmul.f32 %v969_v59, %v1680_v61  ;;  %v1684_v1 = vadd.f32 %v435_v62, %v360_v53 }
 0x170   : > { %v452_v3 = vadd.f32 %v450_v0, %v448_v63  ;;  %v451_v4 = vmul.f32 %v969_v59, %v1684_v1 }
 0x172   : > { %v453_v5 = vrot.slane %v452_v3, 4  ;;  %v459_v6 = vadd.f32 %v451_v4, %v449_v2 }
 0x174   : > { %v454_v7 = vadd.f32 %v453_v5, %v452_v3  ;;  %v460_v8 = vrot.slane %v459_v6, 4  ;;  %v527_v3 = vsub.s32 2, %v1662_v45 }
 0x176   : > { %v461_v9 = vadd.f32 %v460_v8, %v459_v6  ;;  %v455_v10 = vrot.slane %v454_v7, 2 }
 0x178   : > { %v456_v11 = vadd.f32 %v455_v10, %v454_v7  ;;  %v462_v12 = vrot.slane %v461_v9, 2 }
 0x17a   : > { %v457_v13 = vrot.slane %v456_v11, 1  ;;  %v463_v14 = vadd.f32 %v462_v12, %v461_v9 }
 0x17c   : > { %v458_v16 = vadd.f32 %v457_v13, %v456_v11  ;;  %v464_v17 = vrot.slane %v463_v14, 1 }
 0x17e   : > { %v465_v18 = vadd.f32 %v464_v17, %v463_v14  ;;  %v467_v19 = vmul.f32 %v466_v15, %v458_v16 }
 0x180   : > { %v468_v20 = vmul.f32 %v466_v15, %v465_v18  ;;  %v469_v21 = vsub.f32 %v1676_v55, %v467_v19  ;;  %v471_v22 = vsub.f32 %v1680_v61, %v467_v19 }
 0x182   : > { %v470_v23 = vsub.f32 %v1678_v60, %v468_v20  ;;  %v472_v24 = vsub.f32 %v1684_v1, %v468_v20  ;;  %v473_v25 = vmul.f32 %v968_v57, %v469_v21  ;;  %v475_v26 = vmul.f32 %v969_v59, %v471_v22 }
 0x184   : > { %v474_v27 = vmul.f32 %v968_v57, %v470_v23  ;;  %v476_v28 = vmul.f32 %v969_v59, %v472_v24  ;;  %v477_v29 = vmul.f32 %v473_v25, %v473_v25  ;;  %v479_v30 = vmul.f32 %v475_v26, %v475_v26 }
 0x185   : > { %v515_v57 = vsub.s32 1, %v1662_v45 }
 0x186   : > { %v478_v31 = vmul.f32 %v474_v27, %v474_v27  ;;  %v480_v32 = vmul.f32 %v476_v28, %v476_v28  ;;  %v481_v33 = vadd.f32 %v479_v30, %v477_v29 }
 0x188   : > { %v482_v34 = vrot.slane %v481_v33, 4  ;;  %v488_v35 = vadd.f32 %v480_v32, %v478_v31 }
 0x18a   : > { %v483_v36 = vadd.f32 %v482_v34, %v481_v33  ;;  %v489_v37 = vrot.slane %v488_v35, 4 }
 0x18c   : > { %v484_v38 = vrot.slane %v483_v36, 2  ;;  %v490_v39 = vadd.f32 %v489_v37, %v488_v35 }
 0x18e   : > { %v485_v40 = vadd.f32 %v484_v38, %v483_v36  ;;  %v491_v41 = vrot.slane %v490_v39, 2 }
 0x190   : > { %v486_v42 = vrot.slane %v485_v40, 1  ;;  %v492_v43 = vadd.f32 %v491_v41, %v490_v39 }
 0x192   : > { %v487_v44 = vadd.f32 %v486_v42, %v485_v40  ;;  %v493_v46 = vrot.slane %v492_v43, 1 }
 0x194   : > { %v494_v48 = vadd.f32 %v493_v46, %v492_v43  ;;  %v495_v49 = vmul.f32 %v487_v44, %v466_v15 }
 0x196   : > { %v496_v51 = vmul.f32 %v494_v48, %v466_v15  ;;  %v497_v52 = vadd.f32 1e-05, %v495_v49 }
 0x198   : > { %v498_v53 = vadd.f32 1e-05, %v496_v51  ;;  %1143 = vrsqrt.f32 %v497_v52 }
 0x19a   : > { %1145 = vrsqrt.f32 %v498_v53 }
 0x1a5   : > { %v1144_v54 = vpop.eup %1143 }
 0x1a6   : > { %v501_v56 = vmul.f32 %v1144_v54, %v1666_v47 }
 0x1a7   : > { %v1146_v58 = vpop.eup %1145 }
 0x1a8   : > { %v502_v59 = vmul.f32 %v1146_v58, %v1671_v50  ;;  %v503_v62 = vmul.f32 %v501_v56, %v467_v19  ;;  %v516_v2 = vrot.slane %v501_v56, %v515_v57 }
 0x1aa   : > { %v504_v63 = vmul.f32 %v502_v59, %v468_v20  ;;  %v507_v0 = vrot.slane %v503_v62, 7  ;;  %v520_v4 = vrot.slane %v502_v59, %v515_v57  ;;  %v521_v8 = vmul.f32 %v516_v2, %v1676_v55 }
 0x1ab   : > { %v523_v9 = vmul.f32 %v516_v2, %v1680_v61 }
 0x1ac   : > { %v508_v5 = vrot.slane %v504_v63, 7  ;;  %v511_v6 = vsub.f32 %v1666_v47, %v507_v0  ;;  %v522_v11 = vmul.f32 %v520_v4, %v1678_v60  ;;  %v524_v12 = vmul.f32 %v520_v4, %v1684_v1 }
 0x1ad   : > { %v577_v60 = vsub.s32 3, %v1662_v45 }
 0x1ae   : > { %v512_v7 = vsub.f32 %v1671_v50, %v508_v5  ;;  %v528_v10 = vrot.slane %v511_v6, %v527_v3 }
 0x1af   : > { %v578_v1 = vrot.slane %v1666_v47, %v577_v60  ;;  %v582_v22 = vrot.slane %v1671_v50, %v577_v60 }
 0x1b0   : > { %v532_v13 = vrot.slane %v512_v7, %v527_v3  ;;  %v533_v14 = vadd.f32 %v528_v10, %v521_v8  ;;  %v535_v15 = vadd.f32 %v528_v10, %v523_v9 }
 0x1b2   : > { %1147 = vtanh.f32 %v533_v14  ;;  %v534_v16 = vadd.f32 %v532_v13, %v522_v11  ;;  %v536_v17 = vadd.f32 %v532_v13, %v524_v12 }
 0x1b3   : > { %1149 = vtanh.f32 %v535_v15 }
 0x1b4   : > { %1151 = vtanh.f32 %v534_v16 }
 0x1b5   : > { %1153 = vtanh.f32 %v536_v17 }
 0x1bf   : > { %v1148_v18 = vpop.eup %1147 }
 0x1c0   : > { %v1150_v19 = vpop.eup %1149 }
 0x1c1   : > { %v1152_v55 = vpop.eup %1151  ;;  %v541_v20 = vpack.c.bf16 %v1150_v19, %v1148_v18 }
 0x1c2   : > { %v1154_v61 = vpop.eup %1153 }
 0x1c3   : > { %v542_v21 = vpack.c.bf16 %v1154_v61, %v1152_v55 }
 0x1c5   : > { %775 = vmatprep.mubr.bf16.mxu1 %v542_v21 }
 0x1c6   : > { %776 = vmatmul.mubr.bf16.vlgmr.msra.gmra.mxu1 %v541_v20 }
 0x286   : > { %v777_v23 = vpop.f32.mrf.mxu1 }
 0x287   : > { %v778_v24 = vadd.f32 %v777_v23, %v578_v1 }
 0x288   : > { %v779_v25 = vpop.f32.mrf.mxu1 }
 0x289   : > { %786 = vst [vmem:[%s335_s15] sm:$0xff] %v778_v24  ;;  %v780_v26 = vadd.f32 %v779_v25, %v582_v22 }
 0x28a   : > { %v781_v27 = vpop.f32.mrf.mxu1 }
 0x28b   : > { %787 = vst [vmem:[%s335_s15 + $0x8] sm:$0xff] %v780_v26  ;;  %v782_v45 = vadd.f32 %v781_v27, %v578_v1 }
 0x28c   : > { %v783_v47 = vpop.f32.mrf.mxu1 }
 0x28d   : > { %788 = vst [vmem:[%s335_s15 + $0x10] sm:$0xff] %v782_v45  ;;  %v784_v50 = vadd.f32 %v783_v47, %v582_v22 }
 0x28f   : > { %789 = vst [vmem:[%s335_s15 + $0x18] sm:$0xff] %v784_v50 }
 0x290   : > { %1288 = shalt.err (!%p1285_p9)
}
 0x291   : > { %s1289_s9 = scalar_lea.hbm %s1712_s11, 512  ;;  %s1293_s28 = scalar_lea.hbm %s1760_s5, 1024 }
 0x292   : > { %p1290_p11 = scmp.ne.s32.totalorder %s1712_s11, %s1289_s9  ;;  %p1294_p7 = scmp.lt.s32.totalorder %s1712_s11, %s1760_s5 }
 0x293   : > { %p1295_p4 = scmp.lt.s32.totalorder %s1293_s28, %s1289_s9 }
 0x294   : > { %p1291_p12 = pnand %p1290_p11, %p1787_p10 }
 0x295   : > { %p1296_p8 = por %p1295_p4, %p1294_p7 }
 0x296   : > { %p1292_p2 = pneg %p1291_p12 }
 0x298   : > { %p1297_p13 = pnand %p1296_p8, %p1292_p2 }
 0x29a   : > { %1300 = shalt.err (!%p1297_p13)
}
 0x29b   : > { %s1361_s16 = smov 256   ;;  %s1362_s17 = smov 16  }
 0x29c   : > { %1024 = dma.vmem_to_hbm [thread:$0]  (%p1787_p10), %s1707_s14, 512, %s1712_s11, %s791_s1, %s1361_s16, %s1361_s16, %s1362_s17  }
 0x29d PF: > { %s1788_s2 = sld [smem:[#allocation21_spill]]  ;;  %s819_s19 = sand.u32 1, %s1337_s21  }
 0x29e   : > { %p1790_p0 = scmp.ge.s32.totalorder %s1349_s24, 2  ;;  %s820_s30 = scalar_lea.sflag [#allocation6], %s819_s19 }
 0x2a3   : > { %p1789_p1 = scmp.ne.s32.totalorder %s1788_s2, 0 }
 0x2a5   : > { %p1040_p3 = pnand %p1790_p0, %p1789_p1 }
 0x2a7   : > { %p1041_p5 = pneg %p1040_p3 }
 0x2a9   : > { %1332 = dma.done.wait (%p1041_p5), %s820_s30, 512  }
 0x2aa   : > { %1334 = vsyncadd (%p1041_p5), %s820_s30, 4294966784  ;;  %s1791_s24 = sld [smem:[#allocation19_spill]]  ;;  %s1794_s21 = smov %s1341_s22 }
 0x2ab   : > { %s1792_s13 = sld [smem:[#allocation18_spill]] }
 0x2ac   : > { %s1793_s23 = sld [smem:[#allocation20_spill]] }
 0x2b0   : > { %p28_p6 = scmp.ge.s32.totalorder %s1791_s24, 4  }
 0x2b1   : > { %s1795_s22 = smov %s1792_s13 }
 0x2b2   :  { %30 = sbr.rel (!%p28_p6) target bundleno = 16 (0x10), region = 118 }
 0x2b7   :  { %825 = vsyncpa [#allocation5], 1 }
 0x2b8   :  { %827 = vsyncpa [#allocation5 + $0x1], 1 }
 0x2b9   :  { %828 = vsyncpa [#allocation8], 1 }
 0x2ba   :  { %830 = vsyncpa [#allocation8 + $0x1], 1 }
 0x2bb   :  { %831 = vsyncpa [#allocation11], 1 }
 0x2bc   :  { %833 = vsyncpa [#allocation11 + $0x1], 1 }
 0x2bd   :  { %834 = vsyncpa [#allocation6], 1 }
 0x2be   :  { %836 = vsyncpa [#allocation6 + $0x1], 1 }

</bundles_post_ra>
